<compile_context>
chip_gen: v7x
topology: tpu7x:2x2x1
jax: 0.10.0
libtpu: 0.0.40
codegen_flags: <defaults>
</compile_context>

<pallas_src>
import functools

import jax
import jax.numpy as jnp
from jax.experimental import pallas as pl
from jax.experimental.pallas import tpu as pltpu


def _round_up(n, m):
    return (n + m - 1) // m * m


def _fused_head_kernel(x_ref, w_ref, b_ref, o_ref, *, compute_dtype):
    # y = x @ W_all + b_all : MXU matmul with f32 accumulation, VPU bias add.
    x = x_ref[...]
    if compute_dtype is not None:
        # Per-tile cast inside the kernel (hidden under the DMA) -- never cast
        # x in the wrapper, that would add an extra HBM pass.
        x = x.astype(compute_dtype)
    acc = jnp.dot(x, w_ref[...], preferred_element_type=jnp.float32)
    o_ref[...] = (acc + b_ref[...]).astype(o_ref.dtype)


def fused_linear_pallas(x, w_in, b_pad, out_dim, *, batch_tile=256,
                        compute_dtype=None, out_dtype=jnp.float32):
    """y = x @ W + b with every task head fused along a lane-dense output axis.

    x:     [B, D]      unpadded activations (no copy / pad / cast is made here)
    w_in:  [D, O_pad]  fused weights, O_pad a multiple of 128, D unpadded
    b_pad: [1, O_pad]  fused bias (float32)
    Returns [B, out_dim] in out_dtype.
    """
    B, D = x.shape
    Dw, O_pad = w_in.shape
    assert Dw == D and O_pad % 128 == 0

    kernel = functools.partial(_fused_head_kernel, compute_dtype=compute_dtype)

    out_itemsize = jnp.finfo(out_dtype).bits // 8
    cost = pl.CostEstimate(
        flops=2 * B * D * O_pad,
        transcendentals=0,
        bytes_accessed=int(x.size * x.dtype.itemsize
                           + w_in.size * w_in.dtype.itemsize
                           + b_pad.size * 4
                           + B * O_pad * out_itemsize),
    )

    if B <= batch_tile:
        # ---- single block: no grid / pipeline machinery ---------------------
        # Full-extent blocks are legal for any B and any (unaligned) D.
        out = pl.pallas_call(
            kernel,
            out_shape=jax.ShapeDtypeStruct((B, O_pad), out_dtype),
            cost_estimate=cost,
        )(x, w_in, b_pad)
    else:
        # ---- production-scale batch: stream batch tiles, W stays resident ---
        TB = batch_tile
        assert TB % 8 == 0
        # Per-step VMEM: double-buffered x tile + single-buffered resident W +
        # bias + double-buffered out tile.  Pass the limit explicitly (with
        # headroom) instead of relying on the per-generation scoped default.
        need = (2 * TB * _round_up(D, 128) * x.dtype.itemsize
                + _round_up(D, 8) * O_pad * w_in.dtype.itemsize
                + 8 * O_pad * 4
                + 2 * TB * O_pad * out_itemsize)
        vmem_limit = int(min(max(2 * need, 32 << 20), 128 << 20))
        out = pl.pallas_call(
            kernel,
            out_shape=jax.ShapeDtypeStruct((B, O_pad), out_dtype),
            grid=(pl.cdiv(B, TB),),
            in_specs=[
                # x streams in batch tiles; D is a full-extent, unpadded dim.
                pl.BlockSpec((TB, D), lambda i: (i, 0)),
                # W / bias have constant index maps: keep ONE resident copy.
                pl.BlockSpec((D, O_pad), lambda i: (0, 0),
                             pipeline_mode=pl.Buffered(1)),
                pl.BlockSpec((1, O_pad), lambda i: (0, 0),
                             pipeline_mode=pl.Buffered(1)),
            ],
            out_specs=pl.BlockSpec((TB, O_pad), lambda i: (i, 0)),
            compiler_params=pltpu.CompilerParams(
                dimension_semantics=("parallel",),  # megacore sharding on v7x
                vmem_limit_bytes=vmem_limit,
            ),
            cost_estimate=cost,
        )(x, w_in, b_pad)

    # O_pad is the minimal multiple of 128; padded columns are zero and sliced
    # away here.  TODO(synk): allow out_dtype=bf16 when downstream tolerates it
    # to halve output HBM writes (v6e suggestion).
    return out[:, :out_dim]


class MLPHeadPallas:
    """JAX/Pallas equivalent of the PyTorch MLPHead (multi-task linear head)."""

    def __init__(self, input_dim, output_dims, key, *, use_bf16=False,
                 batch_tile=256):
        self.input_dim = int(input_dim)
        self.output_dims = dict(output_dims)
        self.batch_tile = batch_tile
        # bf16 compute is fine on v5e too (MXU is bf16-native; accumulation and
        # bias add stay f32).  Expect ~1e-2 relative error vs an f32 reference.
        self.compute_dtype = jnp.bfloat16 if use_bf16 else None

        # Deterministic synthetic init.
        # TODO(synk): _initialize_layers_base / torch uniform init not
        # replicated; values differ, layer semantics are identical.
        self.params = {}
        self.offsets = {}
        ws, bs = [], []
        off = 0
        for task_name, dim in self.output_dims.items():
            key, wk, bk = jax.random.split(key, 3)
            scale = 1.0 / jnp.sqrt(jnp.float32(input_dim))
            w = jax.random.normal(wk, (input_dim, dim), jnp.float32) * scale  # [D, O]
            b = jax.random.normal(bk, (1, dim), jnp.float32) * 0.01           # [1, O]
            self.params[task_name] = (w, b)
            self.offsets[task_name] = (off, off + dim)
            off += dim
            ws.append(w)
            bs.append(b)
        self.total_out = off

        # One-time fused, lane-dense layout prep (never repeated per forward):
        # concat all task heads along the output axis, zero-pad ONLY the output
        # axis up to a multiple of 128 lanes.  D stays unpadded; the kernel
        # carries it as a full-extent block dim.  Optional bf16 cast of W also
        # happens once here.
        w_all = jnp.concatenate(ws, axis=1)  # [D, O_total]
        b_all = jnp.concatenate(bs, axis=1)  # [1, O_total]
        o_pad = max(_round_up(self.total_out, 128), 128)
        w_pad = (jnp.zeros((self.input_dim, o_pad), jnp.float32)
                 .at[:, : self.total_out].set(w_all))
        self.w_in = w_pad.astype(jnp.bfloat16) if use_bf16 else w_pad
        self.b_pad = (jnp.zeros((1, o_pad), jnp.float32)
                      .at[:, : self.total_out].set(b_all))

    def __call__(self, x):
        # Single Pallas launch covering every task head; x is never copied,
        # padded, or re-cast on the wrapper side.
        y = fused_linear_pallas(
            x, self.w_in, self.b_pad, self.total_out,
            batch_tile=self.batch_tile, compute_dtype=self.compute_dtype,
        )  # [B, O_total] f32
        predictions = {}
        for task_name in self.output_dims:
            lo, hi = self.offsets[task_name]
            pred = y[:, lo:hi]
            if pred.shape[-1] == 1:
                pred = jnp.squeeze(pred, axis=-1)  # matches torch .squeeze(-1)
            predictions[task_name] = pred
        return predictions


if __name__ == "__main__":
    key = jax.random.PRNGKey(0)

    def check(head, x, atol, rtol):
        preds = head(x)
        preds = jax.tree_util.tree_map(jax.block_until_ready, preds)
        for task_name, (w, b) in head.params.items():
            ref = x @ w + b
            if ref.shape[-1] == 1:
                ref = jnp.squeeze(ref, axis=-1)
            assert preds[task_name].shape == ref.shape, (
                task_name, preds[task_name].shape, ref.shape)
            assert jnp.allclose(preds[task_name], ref, atol=atol, rtol=rtol), task_name

    # 1) Small batch -> single-block (no-grid) path, f32.
    key, xk, pk = jax.random.split(key, 3)
    x_small = jax.random.normal(xk, (8, 32), jnp.float32)
    head_small = MLPHeadPallas(32, {"y60_duo": 1, "y30_class": 3}, pk)
    check(head_small, x_small, atol=1e-5, rtol=1e-5)

    # 2) Larger ragged batch -> gridded ("parallel") path with a partial last
    #    batch tile and an unaligned (full-extent) D, f32.
    key, xk, pk = jax.random.split(key, 3)
    x_big = jax.random.normal(xk, (600, 96), jnp.float32)
    out_dims = {"y60_duo": 1, "y30_class": 3, "y5_reg": 2}
    head_big = MLPHeadPallas(96, out_dims, pk, batch_tile=256)
    check(head_big, x_big, atol=1e-4, rtol=1e-4)

    # 3) Same gridded path with in-kernel bf16 compute (looser tolerance is
    #    expected precision loss, not a bug: accumulation + bias stay f32).
    key, pk = jax.random.split(key)
    head_bf16 = MLPHeadPallas(96, out_dims, pk, use_bf16=True, batch_tile=256)
    check(head_bf16, x_big, atol=5e-2, rtol=5e-2)

    print("KERNEL_OK")
</pallas_src>

<mosaic_0001>
module attributes {stable_mosaic.version = 11 : i64} {
  func.func @_fused_head_kernel(%arg0: memref<8x32xf32, #tpu.memory_space<vmem>>, %arg1: memref<32x128xf32, #tpu.memory_space<vmem>>, %arg2: memref<1x128xf32, #tpu.memory_space<vmem>>, %arg3: memref<8x128xf32, #tpu.memory_space<vmem>>) attributes {dimension_semantics = [], scalar_prefetch = 0 : i64, scratch_operands = 0 : i64, tpu.core_type = #tpu.core_type<tc>} {
    %c0 = arith.constant 0 : index
    %c0_0 = arith.constant 0 : index
    %0 = vector.load %arg0[%c0, %c0_0] : memref<8x32xf32, #tpu.memory_space<vmem>>, vector<8x32xf32>
    %c0_1 = arith.constant 0 : index
    %c0_2 = arith.constant 0 : index
    %1 = vector.load %arg1[%c0_1, %c0_2] : memref<32x128xf32, #tpu.memory_space<vmem>>, vector<32x128xf32>
    %cst = arith.constant dense<0.000000e+00> : vector<8x128xf32>
    %2 = tpu.matmul %0, %1, %cst {dimension_numbers = #tpu.dot_dimension_numbers<[1], [0], [0], [1], [0, 0, 1, 1], [], []>} : vector<8x32xf32>, vector<32x128xf32>, vector<8x128xf32> -> vector<8x128xf32>
    %c0_3 = arith.constant 0 : index
    %c0_4 = arith.constant 0 : index
    %3 = vector.load %arg2[%c0_3, %c0_4] : memref<1x128xf32, #tpu.memory_space<vmem>>, vector<1x128xf32>
    %4 = vector.broadcast %3 : vector<1x128xf32> to vector<8x128xf32>
    %5 = arith.addf %2, %4 : vector<8x128xf32>
    %c0_5 = arith.constant 0 : index
    %c0_6 = arith.constant 0 : index
    %6 = vector.load %arg3[%c0_5, %c0_6] : memref<8x128xf32, #tpu.memory_space<vmem>>, vector<8x128xf32>
    tpu.vector_store %arg3[%c0_5, %c0_6], %5 {strides = array<i32>} : memref<8x128xf32, #tpu.memory_space<vmem>>, vector<8x128xf32>,
    return
  }
}

</mosaic_0001>

<bundles_post_ra>
// kernel: tpu_custom_call.1
= control target key start
LH: loop header
LB: loop body
LE: loop exit
PB: predicated region body
PF: predicated region fallthrough
CT: control target
= control target key end

     0   :  { %8 = vsyncpa [#allocation3], 0  ;;  %s322_s0 = inlined_call_operand.hbm [shape: f32[8,32], index: 0, kind: input, shape index: {}]   ;;  %s323_s1 = inlined_call_operand.hbm [shape: f32[32,128], index: 1, kind: input, shape index: {}]   ;;  %s324_s2 = inlined_call_operand.vmem [shape: f32[1,128], index: 2, kind: input, shape index: {}]   ;;  %s325_s3 = inlined_call_operand.hbm [shape: f32[8,128], index: 3, kind: output, shape index: {}]  }
   0x1   :  { %9 = vsyncpa [#allocation6], 0 }
   0x2   :  { %10 = vsyncpa [#allocation4], 0  ;;  %s248_s12 = smov [#allocation2]   ;;  %s249_s14 = smov [#allocation5]  }
   0x3   :  { %s17_s13 = sshll.u32 %s248_s12, 4  ;;  %s26_s15 = sshll.u32 %s249_s14, 4  ;;  %s18_s13 = int_to_ptr.vmem [resolvable:$true] %s17_s13  ;;  %s276_s15 = int_to_ptr.vmem [resolvable:$true] %s26_s15 }
   0x4   :  { %s176_s18 = scalar_lea.hbm %s322_s0, 128 }
   0x5   :  { %p177_p0 = scmp.ne.s32.totalorder %s322_s0, %s176_s18  ;;  %p180_p1 = scmp.lt.u32.totalorder %s176_s18, %s322_s0 }
   0x7   :  { %p182_p2 = pnand %p180_p1, %p177_p0 }
   0x9   :  { %185 = shalt.err (!%p182_p2)
}
   0xa   :  { %s186_s23 = scalar_lea.vmem %s18_s13, 128  ;;  %p191_p4 = scmp.lt.s32.totalorder %s18_s13, %s18_s13 }
   0xb   :  { %p187_p3 = scmp.ne.s32.totalorder %s18_s13, %s186_s23  ;;  %p192_p5 = scmp.lt.s32.totalorder %s186_s23, %s186_s23 }
   0xd   :  { %p193_p6 = por %p192_p5, %p191_p4 }
   0xf   :  { %p194_p7 = pnand %p193_p6, %p187_p3 }
  0x11   :  { %197 = shalt.err (!%p194_p7)
}
  0x12   :  { %20 = dma.hbm_to_vmem [thread:$0]  %s322_s0, 128, %s18_s13, [#allocation3]  }
  0x13   :  { %s198_s28 = scalar_lea.hbm %s323_s1, 512 }
  0x14   :  { %p199_p8 = scmp.ne.s32.totalorder %s323_s1, %s198_s28  ;;  %p202_p9 = scmp.lt.u32.totalorder %s198_s28, %s323_s1 }
  0x16   :  { %p204_p10 = pnand %p202_p9, %p199_p8 }
  0x18   :  { %207 = shalt.err (!%p204_p10)
}
  0x19   :  { %s208_s6 = scalar_lea.vmem %s276_s15, 512  ;;  %p213_p12 = scmp.lt.s32.totalorder %s276_s15, %s276_s15 }
  0x1a   :  { %p209_p11 = scmp.ne.s32.totalorder %s276_s15, %s208_s6  ;;  %p214_p13 = scmp.lt.s32.totalorder %s208_s6, %s208_s6 }
  0x1c   :  { %p215_p0 = por %p214_p13, %p213_p12 }
  0x1e   :  { %p216_p1 = pnand %p215_p0, %p209_p11 }
  0x20   :  { %219 = shalt.err (!%p216_p1)
}
  0x21   :  { %s250_s0 = smov 128   ;;  %s251_s7 = smov 8  }
  0x22   :  { %32 = dma.hbm_to_vmem [thread:$0]  %s323_s1, 512, %s276_s15, [#allocation6], %s250_s0, %s250_s0, %s251_s7  }
  0x23   :  { %242 = dma.done.wait [#allocation3], 128  }
  0x24   :  { %243 = vsyncadd [#allocation3], 4294967168 }
  0x25   :  { %244 = dma.done.wait [#allocation6], 512  }
  0x26   :  { %245 = vsyncadd [#allocation6], 4294966784  ;;  %v252_v0 = vmov 0.0|0.0   ;;  %vm253_vm0 = vmmov 0   ;;  %v254_v1 = vmov 0.0   ;;  %v42_v2 = vld [vmem:[#allocation5] sm:$0xff] }
  0x27   :  { %162 = vmatprep.subr.bf16.mxu0 %v252_v0  ;;  %159 = vmatprep.mubr.msk.f32.mxu0 %vm253_vm0, %v254_v1  ;;  %v43_v3 = vld [vmem:[#allocation5 + $0x8] sm:$0xff]  ;;  %v44_v4 = vld [vmem:[#allocation5 + $0x10] sm:$0xff]  ;;  %v45_v6 = vld [vmem:[#allocation5 + $0x18] sm:$0xff]  ;;  %vm53_vm1 = vcmask 261120   ;;  %s255_s11 = smov [#allocation7]  }
  0x28   :  { %v163_v5 = vpack.c.bf16 %v43_v3, %v42_v2  ;;  %v166_v7 = vpack.c.bf16 %v45_v6, %v44_v4  ;;  %v41_v8 = vld [vmem:[#allocation2] sm:$0xff]  ;;  %s134_s12 = sshll.u32 %s255_s11, 4  ;;  %s135_s12 = int_to_ptr.vmem [resolvable:$true] %s134_s12 }
  0x29   :  { %v144_v9 = vld [vmem:[%s324_s2] ss:$0 sm:$0xff]  ;;  %s220_s13 = scalar_lea.vmem %s135_s12, 128  ;;  %p225_p3 = scmp.lt.s32.totalorder %s135_s12, %s135_s12 }
  0x2a   :  { %164 = vmatpush3.bf16.msra.mxu0 %v163_v5  ;;  %p221_p2 = scmp.ne.s32.totalorder %s135_s12, %s220_s13  ;;  %p226_p4 = scmp.lt.s32.totalorder %s220_s13, %s220_s13 }
  0x2b   :  { %165 = vmatprep.subr.bf16.mxu0 %v252_v0 }
  0x2c   :  { %p227_p5 = por %p226_p4, %p225_p3 }
  0x2e   :  { %167 = vmatpush3.bf16.msra.mxu0 %v166_v7  ;;  %p228_p6 = pnand %p227_p5, %p221_p2 }
  0x31   :  { %160 = vmatmul.mubr.msk.f32.vlgmr.msra.gmra.mrb[0].mxu0 %vm53_vm1, %v41_v8 }
 0x104   :  { %v123_v10 = vpop.f32.mrb[0].mxu0 }
 0x105   :  { %v124_v11 = vadd.f32 %v144_v9, %v123_v10  ;;  %v161_v12 = vpop.f32.mrb[1].mxu0 }
 0x107   :  { %127 = vst [vmem:[#allocation7] sm:$0xff] %v124_v11 }
 0x108   :  { %231 = shalt.err (!%p228_p6)
}
 0x109   :  { %s232_s16 = scalar_lea.hbm %s325_s3, 128 }
 0x10a   :  { %p233_p7 = scmp.ne.s32.totalorder %s325_s3, %s232_s16  ;;  %p236_p8 = scmp.lt.u32.totalorder %s232_s16, %s325_s3 }
 0x10c   :  { %p238_p9 = pnand %p236_p8, %p233_p7 }
 0x10e   :  { %241 = shalt.err (!%p238_p9)
}
 0x10f   :  { %137 = dma.vmem_to_hbm [thread:$0]  %s135_s12, 128, %s325_s3, [#allocation4]  }
 0x110   :  { %246 = dma.done.wait [#allocation4], 128  }
 0x111   :  { %247 = vsyncadd [#allocation4], 4294967168 }
 0x112   :  { %141 = vsyncpa [#allocation3], 1 }
 0x113   :  { %142 = vsyncpa [#allocation6], 1 }
 0x114   :  { %143 = vsyncpa [#allocation4], 1 }

</bundles_post_ra>
